<compile_context>
chip_gen: v7x
topology: tpu7x:2x2x1
jax: 0.10.0
libtpu: 0.0.40
codegen_flags: <defaults>
</compile_context>

<pallas_src>
import jax
import jax.numpy as jnp
from jax.experimental import pallas as pl
from jax.experimental.pallas import tpu as pltpu


def _round_up(n, m):
    return ((n + m - 1) // m) * m


def _head_kernel(x_ref, w1_ref, b1_ref, w2_ref, b2_ref, wc_ref, bc_ref, out_ref):
    # x:  [TB, Hp]   bf16     w1: [Hp, L1p]  bf16    b1: [1, L1p] f32
    # w2: [L1p, L2p] bf16     b2: [1, L2p]   f32
    # wc: [1, L2p]   f32      bc: [1, 1]     f32     out: [TB, 1] f32
    # fc layer 1 + ReLU (bf16 MXU operands, f32 accumulate, f32 elementwise)
    h = jnp.dot(x_ref[...], w1_ref[...], preferred_element_type=jnp.float32)
    h = jnp.maximum(h + b1_ref[...], 0.0)

    # fc layer 2 + ReLU
    h = jnp.dot(h.astype(jnp.bfloat16), w2_ref[...],
                preferred_element_type=jnp.float32)
    h = jnp.maximum(h + b2_ref[...], 0.0)

    # classifier (out_features == 1): lane-aligned [1, L2p] weight row,
    # broadcast-mul (VPU) + lane reduce (XLU) instead of an N=1 MXU matmul.
    logits = jnp.sum(h * wc_ref[...], axis=-1, keepdims=True) + bc_ref[...]
    out_ref[...] = jnp.tanh(logits)


def bert_classifier_head(x, params, tile_b=256):
    """x: [B, hidden] pooled BERT embedding (f32). Returns [B] (squeezed)."""
    w1, b1, w2, b2, wc, bc = params       # wc is a [1, L2] row, bc is [1, 1]
    B, H = x.shape
    L1 = w1.shape[1]
    L2 = w2.shape[1]

    # Pad feature dims to multiples of 128 (lane width) and batch to the tile.
    Hp = _round_up(H, 128)
    L1p = _round_up(L1, 128)
    L2p = _round_up(L2, 128)
    Bp = _round_up(B, tile_b)

    x_p = jnp.pad(x, ((0, Bp - B), (0, Hp - H)))
    w1_p = jnp.pad(w1, ((0, Hp - H), (0, L1p - L1)))
    b1_p = jnp.pad(b1, ((0, 0), (0, L1p - L1)))
    w2_p = jnp.pad(w2, ((0, L1p - L1), (0, L2p - L2)))
    b2_p = jnp.pad(b2, ((0, 0), (0, L2p - L2)))
    wc_p = jnp.pad(wc, ((0, 0), (0, L2p - L2)))

    # bf16 MXU operands, f32 biases / accumulation.
    x_b = x_p.astype(jnp.bfloat16)
    w1_b = w1_p.astype(jnp.bfloat16)
    w2_b = w2_p.astype(jnp.bfloat16)

    grid = (Bp // tile_b,)

    cost = pl.CostEstimate(
        flops=2 * Bp * (Hp * L1p + L1p * L2p + L2p),
        transcendentals=Bp,
        bytes_accessed=(x_b.size * 2 + w1_b.size * 2 + w2_b.size * 2
                        + b1_p.size * 4 + b2_p.size * 4 + wc_p.size * 4
                        + bc.size * 4 + Bp * 4),
    )

    out = pl.pallas_call(
        _head_kernel,
        out_shape=jax.ShapeDtypeStruct((Bp, 1), jnp.float32),
        grid=grid,
        in_specs=[
            pl.BlockSpec((tile_b, Hp), lambda i: (i, 0)),   # x: tiled on batch
            pl.BlockSpec((Hp, L1p), lambda i: (0, 0)),      # w1: VMEM-resident
            pl.BlockSpec((1, L1p), lambda i: (0, 0)),       # b1
            pl.BlockSpec((L1p, L2p), lambda i: (0, 0)),     # w2
            pl.BlockSpec((1, L2p), lambda i: (0, 0)),       # b2
            pl.BlockSpec((1, L2p), lambda i: (0, 0)),       # wc (row)
            pl.BlockSpec((1, 1), lambda i: (0, 0)),         # bc
        ],
        out_specs=pl.BlockSpec((tile_b, 1), lambda i: (i, 0)),
        compiler_params=pltpu.CompilerParams(
            dimension_semantics=("parallel",)),
        cost_estimate=cost,
    )(x_b, w1_b, b1_p, w2_b, b2_p, wc_p, bc)

    return jnp.squeeze(out[:B], axis=1)   # torch.squeeze(x, dim=1)


def init_params(key, input_size, layer_size, minimum_layer_size, number_layers):
    """Deterministic synthetic init mirroring the module's layer sizes.

    number_layers=2 -> fc = [Linear(input, layer_size),
                             Linear(layer_size, max(min, layer_size//2))]
                       classifier = Linear(prev, 1)
    Weights are stored transposed vs. torch.nn.Linear (shape (in, out)) so the
    kernel computes x @ W + b; the classifier weight is kept as a [1, L2] row.
    """
    assert number_layers == 2, "script instantiates the default 2-layer head"
    l1 = layer_size
    l2 = max(minimum_layer_size, layer_size // 2)

    k = jax.random.split(key, 6)

    def lin(kw, kb, fan_in, fan_out):
        bound = 1.0 / jnp.sqrt(fan_in)
        w = jax.random.uniform(kw, (fan_in, fan_out), jnp.float32, -bound, bound)
        b = jax.random.uniform(kb, (1, fan_out), jnp.float32, -bound, bound)
        return w, b

    w1, b1 = lin(k[0], k[1], input_size, l1)
    w2, b2 = lin(k[2], k[3], l1, l2)
    wc_col, bc = lin(k[4], k[5], l2, 1)
    wc_row = wc_col.T                       # lane-aligned [1, L2]
    return (w1, b1, w2, b2, wc_row, bc)


if __name__ == "__main__":
    # Small synthetic shapes: batch=8, BERT pooled hidden=32,
    # layer_size=256 (module default), minimum_layer_size=8, number_layers=2.
    B, HIDDEN, LAYER_SIZE, MIN_LAYER, N_LAYERS = 8, 32, 256, 8, 2

    key = jax.random.PRNGKey(0)
    kx, kp = jax.random.split(key)
    x = jax.random.normal(kx, (B, HIDDEN), jnp.float32)   # pooled BERT embedding
    params = init_params(kp, HIDDEN, LAYER_SIZE, MIN_LAYER, N_LAYERS)

    y = bert_classifier_head(x, params)
    jax.block_until_ready(y)

    # Reference in plain JAX with the same bf16-operand / f32-accumulate math.
    w1, b1, w2, b2, wc, bc = params
    h = jnp.maximum(
        jnp.dot(x.astype(jnp.bfloat16), w1.astype(jnp.bfloat16),
                preferred_element_type=jnp.float32) + b1, 0.0)
    h = jnp.maximum(
        jnp.dot(h.astype(jnp.bfloat16), w2.astype(jnp.bfloat16),
                preferred_element_type=jnp.float32) + b2, 0.0)
    ref = jnp.squeeze(jnp.tanh(jnp.sum(h * wc, axis=-1, keepdims=True) + bc), axis=1)

    assert y.shape == (B,)
    assert jnp.allclose(y, ref, atol=1e-3, rtol=1e-3), (y, ref)

    print("KERNEL_OK")
</pallas_src>

<mosaic_0001>
module attributes {stable_mosaic.version = 11 : i64} {
  func.func @_head_kernel(%arg0: i32, %arg1: memref<256x128xbf16, #tpu.memory_space<vmem>>, %arg2: memref<128x256xbf16, #tpu.memory_space<vmem>>, %arg3: memref<1x256xf32, #tpu.memory_space<vmem>>, %arg4: memref<256x128xbf16, #tpu.memory_space<vmem>>, %arg5: memref<1x128xf32, #tpu.memory_space<vmem>>, %arg6: memref<1x128xf32, #tpu.memory_space<vmem>>, %arg7: memref<1x1xf32, #tpu.memory_space<vmem>>, %arg8: memref<256x1xf32, #tpu.memory_space<vmem>>) attributes {dimension_semantics = [#tpu.dimension_semantics<parallel>], iteration_bounds = array<i64: 1>, scalar_prefetch = 0 : i64, scratch_operands = 0 : i64, tpu.core_type = #tpu.core_type<tc>, window_params = [{transform_indices = @transform_0, window_bounds = array<i64: 256, 128>}, {pipeline_mode = #tpu.pipeline_mode<synchronous>, transform_indices = @transform_1, window_bounds = array<i64: 128, 256>}, {pipeline_mode = #tpu.pipeline_mode<synchronous>, transform_indices = @transform_2, window_bounds = array<i64: 1, 256>}, {pipeline_mode = #tpu.pipeline_mode<synchronous>, transform_indices = @transform_3, window_bounds = array<i64: 256, 128>}, {pipeline_mode = #tpu.pipeline_mode<synchronous>, transform_indices = @transform_4, window_bounds = array<i64: 1, 128>}, {pipeline_mode = #tpu.pipeline_mode<synchronous>, transform_indices = @transform_5, window_bounds = array<i64: 1, 128>}, {pipeline_mode = #tpu.pipeline_mode<synchronous>, transform_indices = @transform_6, window_bounds = array<i64: 1, 1>}, {transform_indices = @transform_7, window_bounds = array<i64: 256, 1>}]} {
    %c0 = arith.constant 0 : index
    %c0_0 = arith.constant 0 : index
    %0 = vector.load %arg1[%c0, %c0_0] : memref<256x128xbf16, #tpu.memory_space<vmem>>, vector<256x128xbf16>
    %c0_1 = arith.constant 0 : index
    %c0_2 = arith.constant 0 : index
    %1 = vector.load %arg2[%c0_1, %c0_2] : memref<128x256xbf16, #tpu.memory_space<vmem>>, vector<128x256xbf16>
    %cst = arith.constant dense<0.000000e+00> : vector<256x256xf32>
    %2 = tpu.matmul %0, %1, %cst {dimension_numbers = #tpu.dot_dimension_numbers<[1], [0], [0], [1], [0, 0, 1, 1], [], []>} : vector<256x128xbf16>, vector<128x256xbf16>, vector<256x256xf32> -> vector<256x256xf32>
    %c0_3 = arith.constant 0 : index
    %c0_4 = arith.constant 0 : index
    %3 = vector.load %arg3[%c0_3, %c0_4] : memref<1x256xf32, #tpu.memory_space<vmem>>, vector<1x256xf32>
    %4 = vector.broadcast %3 : vector<1x256xf32> to vector<256x256xf32>
    %5 = arith.addf %2, %4 : vector<256x256xf32>
    %cst_5 = arith.constant 0.000000e+00 : f32
    %6 = vector.broadcast %cst_5 : f32 to vector<256x256xf32>
    %7 = arith.maximumf %5, %6 : vector<256x256xf32>
    %8 = arith.truncf %7 : vector<256x256xf32> to vector<256x256xbf16>
    %c0_6 = arith.constant 0 : index
    %c0_7 = arith.constant 0 : index
    %9 = vector.load %arg4[%c0_6, %c0_7] : memref<256x128xbf16, #tpu.memory_space<vmem>>, vector<256x128xbf16>
    %cst_8 = arith.constant dense<0.000000e+00> : vector<256x128xf32>
    %10 = tpu.matmul %8, %9, %cst_8 {dimension_numbers = #tpu.dot_dimension_numbers<[1], [0], [0], [1], [0, 0, 1, 1], [], []>} : vector<256x256xbf16>, vector<256x128xbf16>, vector<256x128xf32> -> vector<256x128xf32>
    %c0_9 = arith.constant 0 : index
    %c0_10 = arith.constant 0 : index
    %11 = vector.load %arg5[%c0_9, %c0_10] : memref<1x128xf32, #tpu.memory_space<vmem>>, vector<1x128xf32>
    %12 = vector.broadcast %11 : vector<1x128xf32> to vector<256x128xf32>
    %13 = arith.addf %10, %12 : vector<256x128xf32>
    %cst_11 = arith.constant 0.000000e+00 : f32
    %14 = vector.broadcast %cst_11 : f32 to vector<256x128xf32>
    %15 = arith.maximumf %13, %14 : vector<256x128xf32>
    %c0_12 = arith.constant 0 : index
    %c0_13 = arith.constant 0 : index
    %16 = vector.load %arg6[%c0_12, %c0_13] : memref<1x128xf32, #tpu.memory_space<vmem>>, vector<1x128xf32>
    %17 = vector.broadcast %16 : vector<1x128xf32> to vector<256x128xf32>
    %18 = arith.mulf %15, %17 : vector<256x128xf32>
    %cst_14 = arith.constant dense<0.000000e+00> : vector<256xf32>
    %19 = vector.multi_reduction <add>, %18, %cst_14 [1] : vector<256x128xf32> to vector<256xf32>
    %20 = vector.shape_cast %19 : vector<256xf32> to vector<256x1xf32>
    %c0_15 = arith.constant 0 : index
    %c0_16 = arith.constant 0 : index
    %21 = vector.load %arg7[%c0_15, %c0_16] : memref<1x1xf32, #tpu.memory_space<vmem>>, vector<1x1xf32>
    %22 = vector.broadcast %21 : vector<1x1xf32> to vector<256x1xf32>
    %23 = arith.addf %20, %22 : vector<256x1xf32>
    %24 = math.tanh %23 : vector<256x1xf32>
    %c0_17 = arith.constant 0 : index
    %c0_18 = arith.constant 0 : index
    %25 = vector.load %arg8[%c0_17, %c0_18] : memref<256x1xf32, #tpu.memory_space<vmem>>, vector<256x1xf32>
    tpu.vector_store %arg8[%c0_17, %c0_18], %24 {strides = array<i32>} : memref<256x1xf32, #tpu.memory_space<vmem>>, vector<256x1xf32>,
    return
  }
  func.func @transform_0(%arg0: i32) -> (i32, i32) {
    %c0_i32 = arith.constant 0 : i32
    %c0_i32_0 = arith.constant 0 : i32
    return %arg0, %c0_i32 : i32, i32
  }
  func.func @transform_1(%arg0: i32) -> (i32, i32) {
    %c0_i32 = arith.constant 0 : i32
    %c0_i32_0 = arith.constant 0 : i32
    %c0_i32_1 = arith.constant 0 : i32
    return %c0_i32, %c0_i32_0 : i32, i32
  }
  func.func @transform_2(%arg0: i32) -> (i32, i32) {
    %c0_i32 = arith.constant 0 : i32
    %c0_i32_0 = arith.constant 0 : i32
    %c0_i32_1 = arith.constant 0 : i32
    return %c0_i32, %c0_i32_0 : i32, i32
  }
  func.func @transform_3(%arg0: i32) -> (i32, i32) {
    %c0_i32 = arith.constant 0 : i32
    %c0_i32_0 = arith.constant 0 : i32
    %c0_i32_1 = arith.constant 0 : i32
    return %c0_i32, %c0_i32_0 : i32, i32
  }
  func.func @transform_4(%arg0: i32) -> (i32, i32) {
    %c0_i32 = arith.constant 0 : i32
    %c0_i32_0 = arith.constant 0 : i32
    %c0_i32_1 = arith.constant 0 : i32
    return %c0_i32, %c0_i32_0 : i32, i32
  }
  func.func @transform_5(%arg0: i32) -> (i32, i32) {
    %c0_i32 = arith.constant 0 : i32
    %c0_i32_0 = arith.constant 0 : i32
    %c0_i32_1 = arith.constant 0 : i32
    return %c0_i32, %c0_i32_0 : i32, i32
  }
  func.func @transform_6(%arg0: i32) -> (i32, i32) {
    %c0_i32 = arith.constant 0 : i32
    %c0_i32_0 = arith.constant 0 : i32
    %c0_i32_1 = arith.constant 0 : i32
    return %c0_i32, %c0_i32_0 : i32, i32
  }
  func.func @transform_7(%arg0: i32) -> (i32, i32) {
    %c0_i32 = arith.constant 0 : i32
    %c0_i32_0 = arith.constant 0 : i32
    return %arg0, %c0_i32 : i32, i32
  }
}

</mosaic_0001>

<bundles_post_ra>
// kernel: tpu_custom_call.1
= control target key start
LH: loop header
LB: loop body
LE: loop exit
PB: predicated region body
PF: predicated region fallthrough
CT: control target
= control target key end

     0   :  { %s1907_s0 = inlined_call_operand.hbm [shape: bf16[256,128], index: 0, kind: input, shape index: {}]   ;;  %s1908_s1 = inlined_call_operand.hbm [shape: bf16[128,256], index: 1, kind: input, shape index: {}]   ;;  %s1909_s2 = inlined_call_operand.vmem [shape: f32[1,256], index: 2, kind: input, shape index: {}]   ;;  %s1910_s3 = inlined_call_operand.hbm [shape: bf16[256,128], index: 3, kind: input, shape index: {}]   ;;  %s1911_s4 = inlined_call_operand.vmem [shape: f32[1,128], index: 4, kind: input, shape index: {}]   ;;  %s1912_s5 = inlined_call_operand.vmem [shape: f32[1,128], index: 5, kind: input, shape index: {}]   ;;  %s1913_s6 = inlined_call_operand.<no memory space> [shape: f32[1,1], index: 6, kind: input, shape index: {}]   ;;  %s1914_s7 = inlined_call_operand.vmem [shape: f32[256,1], index: 7, kind: output, shape index: {}]  }
   0x1   :  { %v12_v0 = vstv %s1913_s6 }
   0x2   :  { %13 = vst [vmem:[#allocation2] sm:$0x1] %v12_v0 }
   0x3   :  { %14 = vsyncpa [#allocation4], 0 }
   0x4   :  { %15 = vsyncpa [#allocation6], 0  ;;  %s1497_s26 = smov [#allocation5]   ;;  %s1427_s30 = scalar_lea.hbm %s1908_s1, 2048 }
   0x5   :  { %s33_s27 = sshll.u32 %s1497_s26, 4  ;;  %p1428_p0 = scmp.ne.s32.totalorder %s1908_s1, %s1427_s30  ;;  %s34_s27 = int_to_ptr.vmem [resolvable:$true] %s33_s27 }
   0x6   :  { %p1431_p1 = scmp.lt.u32.totalorder %s1427_s30, %s1908_s1 }
   0x8   :  { %p1433_p2 = pnand %p1431_p1, %p1428_p0 }
   0xa   :  { %1436 = shalt.err (!%p1433_p2)
}
   0xb   :  { %s1437_s6 = scalar_lea.vmem %s34_s27, 2048  ;;  %p1442_p4 = scmp.lt.s32.totalorder %s34_s27, %s34_s27 }
   0xc   :  { %p1438_p3 = scmp.ne.s32.totalorder %s34_s27, %s1437_s6  ;;  %p1443_p5 = scmp.lt.s32.totalorder %s1437_s6, %s1437_s6 }
   0xe   :  { %p1444_p6 = por %p1443_p5, %p1442_p4 }
  0x10   :  { %p1445_p7 = pnand %p1444_p6, %p1438_p3 }
  0x12   :  { %1448 = shalt.err (!%p1445_p7)
}
  0x13   :  { %s1498_s12 = smov 128   ;;  %s1499_s13 = smov 8  }
  0x14   :  { %39 = dma.hbm_to_vmem [thread:$0]  %s1908_s1, 2048, %s34_s27, [#allocation6], %s1498_s12, %s1498_s12, %s1499_s13  }
  0x15   :  { %s1500_s16 = smov [#allocation3]   ;;  %s1449_s20 = scalar_lea.hbm %s1907_s0, 2048 }
  0x16   :  { %s21_s17 = sshll.u32 %s1500_s16, 4  ;;  %p1450_p8 = scmp.ne.s32.totalorder %s1907_s0, %s1449_s20  ;;  %s22_s17 = int_to_ptr.vmem [resolvable:$true] %s21_s17 }
  0x17   :  { %p1453_p9 = scmp.lt.u32.totalorder %s1449_s20, %s1907_s0 }
  0x19   :  { %p1455_p10 = pnand %p1453_p9, %p1450_p8 }
  0x1b   :  { %1458 = shalt.err (!%p1455_p10)
}
  0x1c   :  { %s1459_s25 = scalar_lea.vmem %s22_s17, 2048  ;;  %p1464_p12 = scmp.lt.s32.totalorder %s22_s17, %s22_s17 }
  0x1d   :  { %p1460_p11 = scmp.ne.s32.totalorder %s22_s17, %s1459_s25  ;;  %p1465_p13 = scmp.lt.s32.totalorder %s1459_s25, %s1459_s25 }
  0x1f   :  { %p1466_p0 = por %p1465_p13, %p1464_p12 }
  0x21   :  { %p1467_p1 = pnand %p1466_p0, %p1460_p11 }
  0x23   :  { %1470 = shalt.err (!%p1467_p1)
}
  0x24   :  { %s1501_s1 = smov 64   ;;  %s1502_s26 = smov 4  }
  0x25   :  { %27 = dma.hbm_to_vmem [thread:$0]  %s1907_s0, 2048, %s22_s17, [#allocation4], %s1501_s1, %s1501_s1, %s1502_s26  }
  0x26   :  { %s1503_s29 = smov [#allocation7]   ;;  %s1471_s10 = scalar_lea.hbm %s1910_s3, 2048 }
  0x27   :  { %s47_s30 = sshll.u32 %s1503_s29, 4  ;;  %p1472_p2 = scmp.ne.s32.totalorder %s1910_s3, %s1471_s10  ;;  %s48_s30 = int_to_ptr.vmem [resolvable:$true] %s47_s30 }
  0x28   :  { %p1475_p3 = scmp.lt.u32.totalorder %s1471_s10, %s1910_s3 }
  0x2a   :  { %p1477_p4 = pnand %p1475_p3, %p1472_p2 }
  0x2c   :  { %1480 = shalt.err (!%p1477_p4)
}
  0x2d   :  { %s1481_s14 = scalar_lea.vmem %s48_s30, 2048  ;;  %p1486_p6 = scmp.lt.s32.totalorder %s48_s30, %s48_s30 }
  0x2e   :  { %p1482_p5 = scmp.ne.s32.totalorder %s48_s30, %s1481_s14  ;;  %p1487_p7 = scmp.lt.s32.totalorder %s1481_s14, %s1481_s14 }
  0x30   :  { %p1488_p8 = por %p1487_p7, %p1486_p6 }
  0x32   :  { %p1489_p9 = pnand %p1488_p8, %p1482_p5 }
  0x34   :  { %1492 = shalt.err (!%p1489_p9)
}
  0x35   :  { %53 = dma.hbm_to_vmem [thread:$0]  %s1910_s3, 2048, %s48_s30, [#allocation6], %s1501_s1, %s1501_s1, %s1502_s26  }
  0x36   :  { %1493 = dma.done.wait [#allocation4], 2048  }
  0x37   :  { %1494 = vsyncadd [#allocation4], 4294965248 }
  0x38   :  { %1495 = dma.done.wait [#allocation6], 4096  }
  0x39   :  { %1496 = vsyncadd [#allocation6], 4294963200  ;;  %v1504_v1 = vmov 0   ;;  %v1307_v2 = vld [vmem:[#allocation5 + $0x4] ss:$8 sps:$4 sm:$0xff]   ;;  %v1351_v23 = vld [vmem:[#allocation7 + $0x50] sm:$0xff]   ;;  %v120_v50 = vlaneseq }
  0x3a   :  { %338 = vmatprep.mubr.bf16.mxu0 %v1504_v1  ;;  %v1309_v3 = vld [vmem:[#allocation5] ss:$8 sps:$4 sm:$0xff]   ;;  %306 = vmatprep.subr.bf16.mxu0 %v1307_v2  ;;  %v1310_v4 = vld [vmem:[#allocation5 + $0x14] ss:$8 sps:$4 sm:$0xff]   ;;  %v1312_v5 = vld [vmem:[#allocation5 + $0x10] ss:$8 sps:$4 sm:$0xff]  }
  0x3b   :  { %307 = vmatpush1.bf16.msra.mxu0 %v1309_v3  ;;  %v1313_v6 = vld [vmem:[#allocation5 + $0x24] ss:$8 sps:$4 sm:$0xff]   ;;  %v1315_v7 = vld [vmem:[#allocation5 + $0x20] ss:$8 sps:$4 sm:$0xff]   ;;  %v1316_v8 = vld [vmem:[#allocation5 + $0x34] ss:$8 sps:$4 sm:$0xff]  }
  0x3c   :  { %308 = vmatprep.subr.bf16.mxu0 %v1310_v4  ;;  %v1318_v9 = vld [vmem:[#allocation5 + $0x30] ss:$8 sps:$4 sm:$0xff]   ;;  %v1319_v10 = vld [vmem:[#allocation5 + $0x44] ss:$8 sps:$4 sm:$0xff]   ;;  %v1321_v11 = vld [vmem:[#allocation5 + $0x40] ss:$8 sps:$4 sm:$0xff]  }
  0x3d   :  { %v1322_v12 = vld [vmem:[#allocation5 + $0x54] ss:$8 sps:$4 sm:$0xff]   ;;  %v1324_v13 = vld [vmem:[#allocation5 + $0x50] ss:$8 sps:$4 sm:$0xff]   ;;  %v1325_v14 = vld [vmem:[#allocation5 + $0x64] ss:$8 sps:$4 sm:$0xff]  }
  0x3e   :  { %v1327_v15 = vld [vmem:[#allocation5 + $0x60] ss:$8 sps:$4 sm:$0xff]   ;;  %v1328_v16 = vld [vmem:[#allocation5 + $0x74] ss:$8 sps:$4 sm:$0xff]   ;;  %v1330_v17 = vld [vmem:[#allocation5 + $0x70] ss:$8 sps:$4 sm:$0xff]  }
  0x3f   :  { %309 = vmatpush1.bf16.msra.mxu0 %v1312_v5  ;;  %v1347_v18 = vld [vmem:[#allocation7 + $0x40] sm:$0xff]   ;;  %v1349_v21 = vld [vmem:[#allocation7 + $0x48] sm:$0xff]   ;;  %v1352_v24 = vld [vmem:[#allocation7 + $0x10] sm:$0xff]   ;;  %v121_v51 = vshrl.u32 %v120_v50, 7  ;;  %vm1097_vm0 = vcmask 7168  }
  0x40   :  { %310 = vmatprep.subr.bf16.mxu0 %v1313_v6  ;;  %v1331_v19 = vld [vmem:[#allocation3] sm:$0xff]   ;;  %1187 = vmatprep.subr.bf16.mxu1 %v1347_v18  ;;  %v1350_v22 = vld [vmem:[#allocation7 + $0x8] sm:$0xff]   ;;  %v1353_v25 = vld [vmem:[#allocation7 + $0x58] sm:$0xff]  }
  0x41   :  { %v1348_v20 = vld [vmem:[#allocation7] sm:$0xff]   ;;  %v1332_v26 = vld [vmem:[#allocation3 + $0x8] sm:$0xff]   ;;  %v1354_v27 = vld [vmem:[#allocation7 + $0x18] sm:$0xff]   ;;  %v122_v52 = vsub.s32 0, %v121_v51  ;;  %v126_v54 = vsub.s32 1, %v121_v51 }
  0x42   :  { %1188 = vmatpush3.bf16.msra.mxu1 %v1348_v20  ;;  %v1355_v28 = vld [vmem:[#allocation7 + $0x60] sm:$0xff]   ;;  %v1357_v30 = vld [vmem:[#allocation7 + $0x68] sm:$0xff]   ;;  %v1333_v31 = vld [vmem:[#allocation3 + $0x10] sm:$0xff]  }
  0x43   :  { %311 = vmatpush1.bf16.msra.mxu0 %v1315_v7  ;;  %1189 = vmatprep.subr.bf16.mxu1 %v1349_v21  ;;  %v1356_v29 = vld [vmem:[#allocation7 + $0x20] sm:$0xff]   ;;  %v1334_v32 = vld [vmem:[#allocation3 + $0x18] sm:$0xff]   ;;  %v1336_v34 = vld [vmem:[#allocation3 + $0x28] sm:$0xff]  }
  0x44   :  { %312 = vmatprep.subr.bf16.mxu0 %v1316_v8  ;;  %v1335_v33 = vld [vmem:[#allocation3 + $0x20] sm:$0xff]   ;;  %v1337_v35 = vld [vmem:[#allocation3 + $0x30] sm:$0xff]   ;;  %v1338_v36 = vld [vmem:[#allocation3 + $0x38] sm:$0xff]  }
  0x45   :  { %v1339_v37 = vld [vmem:[#allocation3 + $0x40] sm:$0xff]   ;;  %v1340_v38 = vld [vmem:[#allocation3 + $0x48] sm:$0xff]   ;;  %v1341_v39 = vld [vmem:[#allocation3 + $0x50] sm:$0xff]  }
  0x46   :  { %1190 = vmatpush3.bf16.msra.mxu1 %v1350_v22  ;;  %v1358_v40 = vld [vmem:[#allocation7 + $0x28] sm:$0xff]   ;;  %v1342_v41 = vld [vmem:[#allocation3 + $0x58] sm:$0xff]   ;;  %v1359_v42 = vld [vmem:[#allocation7 + $0x70] sm:$0xff]  }
  0x47   :  { %313 = vmatpush1.bf16.msra.mxu0 %v1318_v9  ;;  %1191 = vmatprep.subr.bf16.mxu1 %v1351_v23  ;;  %v1360_v43 = vld [vmem:[#allocation7 + $0x30] sm:$0xff]   ;;  %v1361_v44 = vld [vmem:[#allocation7 + $0x78] sm:$0xff]   ;;  %v1343_v46 = vld [vmem:[#allocation3 + $0x60] sm:$0xff]  }
  0x48   :  { %314 = vmatprep.subr.bf16.mxu0 %v1319_v10  ;;  %v1362_v45 = vld [vmem:[#allocation7 + $0x38] sm:$0xff]   ;;  %v1344_v47 = vld [vmem:[#allocation3 + $0x68] sm:$0xff]   ;;  %v1345_v48 = vld [vmem:[#allocation3 + $0x70] sm:$0xff]  }
  0x49   :  { %v1346_v49 = vld [vmem:[#allocation3 + $0x78] sm:$0xff]  }
  0x4a   :  { %1192 = vmatpush3.bf16.msra.mxu1 %v1352_v24  ;;  %v118_v53 = vld [vmem:[%s1909_s2] sm:$0x3] }
  0x4b   :  { %315 = vmatpush1.bf16.msra.mxu0 %v1321_v11  ;;  %1193 = vmatprep.subr.bf16.mxu1 %v1353_v25  ;;  %v1603_v55 = vrot.slane %v118_v53, %v122_v52  ;;  %v1605_v56 = vrot.slane %v118_v53, %v126_v54 }
  0x4c   :  { %316 = vmatprep.subr.bf16.mxu0 %v1322_v12 }
  0x4e   :  { %1194 = vmatpush3.bf16.msra.mxu1 %v1354_v27 }
  0x4f   :  { %317 = vmatpush1.bf16.msra.mxu0 %v1324_v13  ;;  %1195 = vmatprep.subr.bf16.mxu1 %v1355_v28 }
  0x50   :  { %318 = vmatprep.subr.bf16.mxu0 %v1325_v14 }
  0x52   :  { %1196 = vmatpush3.bf16.msra.mxu1 %v1356_v29 }
  0x53   :  { %319 = vmatpush1.bf16.msra.mxu0 %v1327_v15  ;;  %1197 = vmatprep.subr.bf16.mxu1 %v1357_v30 }
  0x54   :  { %320 = vmatprep.subr.bf16.mxu0 %v1328_v16 }
  0x56   :  { %1198 = vmatpush3.bf16.msra.mxu1 %v1358_v40 }
  0x57   :  { %321 = vmatpush1.bf16.msra.mxu0 %v1330_v17  ;;  %1199 = vmatprep.subr.bf16.mxu1 %v1359_v42 }
  0x5a   :  { %339 = vmatmul.mubr.bf16.vlgmr.msra.gmra.mrb[0].mxu0 %v1331_v19  ;;  %1200 = vmatpush3.bf16.msra.mxu1 %v1360_v43 }
  0x5b   :  { %348 = vmatprep.mubr.bf16.mxu0 %v1504_v1  ;;  %1201 = vmatprep.subr.bf16.mxu1 %v1361_v44 }
  0x5e   :  { %1202 = vmatpush3.bf16.msra.mxu1 %v1362_v45 }
  0x62   :  { %349 = vmatmul.mubr.bf16.gmra.mrb[4].mxu0 %v1332_v26 }
  0x63   :  { %358 = vmatprep.mubr.bf16.mxu0 %v1504_v1 }
  0x6a   :  { %359 = vmatmul.mubr.bf16.gmra.mrb[8].mxu0 %v1333_v31 }
  0x6b   :  { %368 = vmatprep.mubr.bf16.mxu0 %v1504_v1 }
  0x72   :  { %369 = vmatmul.mubr.bf16.gmra.mrb[12].mxu0 %v1334_v32 }
  0x73   :  { %378 = vmatprep.mubr.bf16.mxu0 %v1504_v1 }
  0x7a   :  { %379 = vmatmul.mubr.bf16.gmra.mrb[16].mxu0 %v1335_v33 }
  0x7b   :  { %388 = vmatprep.mubr.bf16.mxu0 %v1504_v1 }
  0x82   :  { %389 = vmatmul.mubr.bf16.gmra.mrb[20].mxu0 %v1336_v34 }
  0x83   :  { %398 = vmatprep.mubr.bf16.mxu0 %v1504_v1 }
  0x8a   :  { %399 = vmatmul.mubr.bf16.gmra.mrb[24].mxu0 %v1337_v35 }
  0x8b   :  { %408 = vmatprep.mubr.bf16.mxu0 %v1504_v1 }
  0x92   :  { %409 = vmatmul.mubr.bf16.gmra.mrb[28].mxu0 %v1338_v36 }
  0x93   :  { %418 = vmatprep.mubr.bf16.mxu0 %v1504_v1 }
  0x9a   :  { %419 = vmatmul.mubr.bf16.gmra.mrb[32].mxu0 %v1339_v37 }
  0x9b   :  { %428 = vmatprep.mubr.bf16.mxu0 %v1504_v1 }
  0xa2   :  { %429 = vmatmul.mubr.bf16.gmra.mrb[36].mxu0 %v1340_v38 }
  0xa3   :  { %438 = vmatprep.mubr.bf16.mxu0 %v1504_v1 }
  0xaa   :  { %439 = vmatmul.mubr.bf16.gmra.mrb[40].mxu0 %v1341_v39 }
  0xab   :  { %448 = vmatprep.mubr.bf16.mxu0 %v1504_v1 }
  0xb2   :  { %449 = vmatmul.mubr.bf16.gmra.mrb[44].mxu0 %v1342_v41 }
  0xb3   :  { %458 = vmatprep.mubr.bf16.mxu0 %v1504_v1 }
  0xba   :  { %459 = vmatmul.mubr.bf16.gmra.mrb[48].mxu0 %v1343_v46 }
  0xbb   :  { %468 = vmatprep.mubr.bf16.mxu0 %v1504_v1 }
  0xc2   :  { %469 = vmatmul.mubr.bf16.gmra.mrb[52].mxu0 %v1344_v47 }
  0xc3   :  { %478 = vmatprep.mubr.bf16.mxu0 %v1504_v1 }
  0xca   :  { %479 = vmatmul.mubr.bf16.gmra.mrb[56].mxu0 %v1345_v48 }
  0xcb   :  { %488 = vmatprep.mubr.bf16.mxu0 %v1504_v1 }
  0xd2   :  { %489 = vmatmul.mubr.bf16.gmra.mrb[60].mxu0 %v1346_v49 }
 0x12d   :  { %v340_v57 = vpop.f32.mrb[0].mxu0 }
 0x12e   :  { %v341_v58 = vadd.f32 %v340_v57, %v1603_v55  ;;  %v342_v59 = vpop.f32.mrb[1].mxu0 }
 0x12f   :  { %v343_v60 = vadd.f32 %v342_v59, %v1605_v56  ;;  %v344_v61 = vpop.f32.mrb[2].mxu0 }
 0x130   :  { %v345_v62 = vadd.f32 %v344_v61, %v1603_v55  ;;  %v346_v63 = vpop.f32.mrb[3].mxu0  ;;  %v499_v1 = vmax.f32 %v341_v58, 0.0 }
 0x131   :  { %v347_v0 = vadd.f32 %v346_v63, %v1605_v56  ;;  %v500_v3 = vmax.f32 %v343_v60, 0.0 }
 0x132   :  { %v501_v2 = vmax.f32 %v345_v62, 0.0 }
 0x133   :  { %v502_v4 = vmax.f32 %v347_v0, 0.0 }
 0x134   :  { %v563_v5 = vpack.c.bf16 %v501_v2, %v499_v1 }
 0x135   :  { %v350_v6 = vpop.f32.mrb[4].mxu0  ;;  %v564_v7 = vpack.c.bf16 %v502_v4, %v500_v3 }
 0x136   :  { %v351_v8 = vadd.f32 %v350_v6, %v1603_v55  ;;  %v352_v9 = vpop.f32.mrb[5].mxu0 }
 0x137   :  { %v353_v10 = vadd.f32 %v352_v9, %v1605_v56  ;;  %v354_v11 = vpop.f32.mrb[6].mxu0  ;;  %762 = vmatprep.mubr.bf16.mxu1 %v564_v7 }
 0x138   :  { %v355_v12 = vadd.f32 %v354_v11, %v1603_v55  ;;  %v356_v13 = vpop.f32.mrb[7].mxu0  ;;  %763 = vmatmul.mubr.bf16.vlgmr.msra.gmra.mrb[0].mxu1 %v563_v5  ;;  %v503_v15 = vmax.f32 %v351_v8, 0.0 }
 0x139   :  { %v357_v14 = vadd.f32 %v356_v13, %v1605_v56  ;;  %v504_v17 = vmax.f32 %v353_v10, 0.0 }
 0x13a   :  { %v505_v16 = vmax.f32 %v355_v12, 0.0 }
 0x13b   :  { %v506_v18 = vmax.f32 %v357_v14, 0.0 }
 0x13c   :  { %v565_v19 = vpack.c.bf16 %v505_v16, %v503_v15 }
 0x13d   :  { %v566_v20 = vpack.c.bf16 %v506_v18, %v504_v17  ;;  %v360_v21 = vpop.f32.mrb[8].mxu0 }
 0x13e   :  { %v361_v22 = vadd.f32 %v360_v21, %v1603_v55  ;;  %v362_v23 = vpop.f32.mrb[9].mxu0 }
 0x13f   :  { %v363_v24 = vadd.f32 %v362_v23, %v1605_v56  ;;  %v364_v25 = vpop.f32.mrb[10].mxu0  ;;  %770 = vmatprep.mubr.bf16.mxu1 %v566_v20 }
 0x140   :  { %v365_v26 = vadd.f32 %v364_v25, %v1603_v55  ;;  %v366_v27 = vpop.f32.mrb[11].mxu0  ;;  %771 = vmatmul.mubr.bf16.gmra.mrb[4].mxu1 %v565_v19  ;;  %v507_v29 = vmax.f32 %v361_v22, 0.0 }
 0x141   :  { %v367_v28 = vadd.f32 %v366_v27, %v1605_v56  ;;  %v508_v31 = vmax.f32 %v363_v24, 0.0 }
 0x142   :  { %v509_v30 = vmax.f32 %v365_v26, 0.0 }
 0x143   :  { %v510_v32 = vmax.f32 %v367_v28, 0.0 }
 0x144   :  { %v567_v33 = vpack.c.bf16 %v509_v30, %v507_v29 }
 0x145   :  { %v568_v34 = vpack.c.bf16 %v510_v32, %v508_v31  ;;  %v370_v35 = vpop.f32.mrb[12].mxu0 }
 0x146   :  { %v371_v36 = vadd.f32 %v370_v35, %v1603_v55  ;;  %v372_v37 = vpop.f32.mrb[13].mxu0 }
 0x147   :  { %v373_v38 = vadd.f32 %v372_v37, %v1605_v56  ;;  %v374_v39 = vpop.f32.mrb[14].mxu0  ;;  %778 = vmatprep.mubr.bf16.mxu1 %v568_v34 }
 0x148   :  { %v375_v40 = vadd.f32 %v374_v39, %v1603_v55  ;;  %v376_v41 = vpop.f32.mrb[15].mxu0  ;;  %779 = vmatmul.mubr.bf16.gmra.mrb[8].mxu1 %v567_v33  ;;  %v511_v43 = vmax.f32 %v371_v36, 0.0 }
 0x149   :  { %v377_v42 = vadd.f32 %v376_v41, %v1605_v56  ;;  %v512_v45 = vmax.f32 %v373_v38, 0.0 }
 0x14a   :  { %v513_v44 = vmax.f32 %v375_v40, 0.0 }
 0x14b   :  { %v514_v46 = vmax.f32 %v377_v42, 0.0 }
 0x14c   :  { %v569_v47 = vpack.c.bf16 %v513_v44, %v511_v43 }
 0x14d   :  { %v570_v48 = vpack.c.bf16 %v514_v46, %v512_v45  ;;  %v380_v49 = vpop.f32.mrb[16].mxu0 }
 0x14e   :  { %v381_v50 = vadd.f32 %v380_v49, %v1603_v55  ;;  %v382_v51 = vpop.f32.mrb[17].mxu0 }
 0x14f   :  { %v383_v52 = vadd.f32 %v382_v51, %v1605_v56  ;;  %v384_v53 = vpop.f32.mrb[18].mxu0  ;;  %786 = vmatprep.mubr.bf16.mxu1 %v570_v48 }
 0x150   :  { %v385_v54 = vadd.f32 %v384_v53, %v1603_v55  ;;  %v386_v57 = vpop.f32.mrb[19].mxu0  ;;  %787 = vmatmul.mubr.bf16.gmra.mrb[12].mxu1 %v569_v47  ;;  %v515_v59 = vmax.f32 %v381_v50, 0.0 }
 0x151   :  { %v387_v58 = vadd.f32 %v386_v57, %v1605_v56  ;;  %v516_v61 = vmax.f32 %v383_v52, 0.0 }
 0x152   :  { %v517_v60 = vmax.f32 %v385_v54, 0.0 }
 0x153   :  { %v518_v62 = vmax.f32 %v387_v58, 0.0 }
 0x154   :  { %v571_v63 = vpack.c.bf16 %v517_v60, %v515_v59 }
 0x155   :  { %v572_v0 = vpack.c.bf16 %v518_v62, %v516_v61  ;;  %v390_v1 = vpop.f32.mrb[20].mxu0 }
 0x156   :  { %v391_v2 = vadd.f32 %v390_v1, %v1603_v55  ;;  %v392_v3 = vpop.f32.mrb[21].mxu0 }
 0x157   :  { %v393_v4 = vadd.f32 %v392_v3, %v1605_v56  ;;  %v394_v5 = vpop.f32.mrb[22].mxu0  ;;  %794 = vmatprep.mubr.bf16.mxu1 %v572_v0 }
 0x158   :  { %v395_v6 = vadd.f32 %v394_v5, %v1603_v55  ;;  %v396_v7 = vpop.f32.mrb[23].mxu0  ;;  %795 = vmatmul.mubr.bf16.gmra.mrb[16].mxu1 %v571_v63  ;;  %v519_v9 = vmax.f32 %v391_v2, 0.0 }
 0x159   :  { %v397_v8 = vadd.f32 %v396_v7, %v1605_v56  ;;  %v520_v11 = vmax.f32 %v393_v4, 0.0 }
 0x15a   :  { %v521_v10 = vmax.f32 %v395_v6, 0.0 }
 0x15b   :  { %v522_v12 = vmax.f32 %v397_v8, 0.0 }
 0x15c   :  { %v573_v13 = vpack.c.bf16 %v521_v10, %v519_v9 }
 0x15d   :  { %v574_v14 = vpack.c.bf16 %v522_v12, %v520_v11  ;;  %v400_v15 = vpop.f32.mrb[24].mxu0 }
 0x15e   :  { %v401_v16 = vadd.f32 %v400_v15, %v1603_v55  ;;  %v402_v17 = vpop.f32.mrb[25].mxu0 }
 0x15f   :  { %v403_v18 = vadd.f32 %v402_v17, %v1605_v56  ;;  %v404_v19 = vpop.f32.mrb[26].mxu0  ;;  %802 = vmatprep.mubr.bf16.mxu1 %v574_v14 }
 0x160   :  { %v405_v20 = vadd.f32 %v404_v19, %v1603_v55  ;;  %v406_v21 = vpop.f32.mrb[27].mxu0  ;;  %803 = vmatmul.mubr.bf16.gmra.mrb[20].mxu1 %v573_v13  ;;  %v523_v23 = vmax.f32 %v401_v16, 0.0 }
 0x161   :  { %v407_v22 = vadd.f32 %v406_v21, %v1605_v56  ;;  %v524_v25 = vmax.f32 %v403_v18, 0.0 }
 0x162   :  { %v525_v24 = vmax.f32 %v405_v20, 0.0 }
 0x163   :  { %v526_v26 = vmax.f32 %v407_v22, 0.0 }
 0x164   :  { %v575_v27 = vpack.c.bf16 %v525_v24, %v523_v23 }
 0x165   :  { %v576_v28 = vpack.c.bf16 %v526_v26, %v524_v25  ;;  %v410_v29 = vpop.f32.mrb[28].mxu0 }
 0x166   :  { %v411_v30 = vadd.f32 %v410_v29, %v1603_v55  ;;  %v412_v31 = vpop.f32.mrb[29].mxu0 }
 0x167   :  { %v413_v32 = vadd.f32 %v412_v31, %v1605_v56  ;;  %v414_v33 = vpop.f32.mrb[30].mxu0  ;;  %810 = vmatprep.mubr.bf16.mxu1 %v576_v28 }
 0x168   :  { %v415_v34 = vadd.f32 %v414_v33, %v1603_v55  ;;  %v416_v35 = vpop.f32.mrb[31].mxu0  ;;  %811 = vmatmul.mubr.bf16.gmra.mrb[24].mxu1 %v575_v27  ;;  %v527_v37 = vmax.f32 %v411_v30, 0.0 }
 0x169   :  { %v417_v36 = vadd.f32 %v416_v35, %v1605_v56  ;;  %v528_v39 = vmax.f32 %v413_v32, 0.0 }
 0x16a   :  { %v529_v38 = vmax.f32 %v415_v34, 0.0 }
 0x16b   :  { %v530_v40 = vmax.f32 %v417_v36, 0.0 }
 0x16c   :  { %v577_v41 = vpack.c.bf16 %v529_v38, %v527_v37 }
 0x16d   :  { %v578_v42 = vpack.c.bf16 %v530_v40, %v528_v39  ;;  %v420_v43 = vpop.f32.mrb[32].mxu0 }
 0x16e   :  { %v421_v44 = vadd.f32 %v420_v43, %v1603_v55  ;;  %v422_v45 = vpop.f32.mrb[33].mxu0 }
 0x16f   :  { %v423_v46 = vadd.f32 %v422_v45, %v1605_v56  ;;  %v424_v47 = vpop.f32.mrb[34].mxu0  ;;  %818 = vmatprep.mubr.bf16.mxu1 %v578_v42 }
 0x170   :  { %v425_v48 = vadd.f32 %v424_v47, %v1603_v55  ;;  %v426_v49 = vpop.f32.mrb[35].mxu0  ;;  %819 = vmatmul.mubr.bf16.gmra.mrb[28].mxu1 %v577_v41  ;;  %v531_v51 = vmax.f32 %v421_v44, 0.0 }
 0x171   :  { %v427_v50 = vadd.f32 %v426_v49, %v1605_v56  ;;  %v532_v53 = vmax.f32 %v423_v46, 0.0 }
 0x172   :  { %v533_v52 = vmax.f32 %v425_v48, 0.0 }
 0x173   :  { %v534_v54 = vmax.f32 %v427_v50, 0.0 }
 0x174   :  { %v579_v57 = vpack.c.bf16 %v533_v52, %v531_v51 }
 0x175   :  { %v580_v58 = vpack.c.bf16 %v534_v54, %v532_v53  ;;  %v430_v59 = vpop.f32.mrb[36].mxu0 }
 0x176   :  { %v431_v60 = vadd.f32 %v430_v59, %v1603_v55  ;;  %v432_v61 = vpop.f32.mrb[37].mxu0 }
 0x177   :  { %v433_v62 = vadd.f32 %v432_v61, %v1605_v56  ;;  %v434_v63 = vpop.f32.mrb[38].mxu0  ;;  %826 = vmatprep.mubr.bf16.mxu1 %v580_v58 }
 0x178   :  { %v435_v0 = vadd.f32 %v434_v63, %v1603_v55  ;;  %v436_v1 = vpop.f32.mrb[39].mxu0  ;;  %827 = vmatmul.mubr.bf16.gmra.mrb[32].mxu1 %v579_v57  ;;  %v535_v3 = vmax.f32 %v431_v60, 0.0 }
 0x179   :  { %v437_v2 = vadd.f32 %v436_v1, %v1605_v56  ;;  %v536_v5 = vmax.f32 %v433_v62, 0.0 }
 0x17a   :  { %v537_v4 = vmax.f32 %v435_v0, 0.0 }
 0x17b   :  { %v538_v6 = vmax.f32 %v437_v2, 0.0 }
 0x17c   :  { %v581_v7 = vpack.c.bf16 %v537_v4, %v535_v3 }
 0x17d   :  { %v582_v8 = vpack.c.bf16 %v538_v6, %v536_v5  ;;  %v440_v9 = vpop.f32.mrb[40].mxu0 }
 0x17e   :  { %v441_v10 = vadd.f32 %v440_v9, %v1603_v55  ;;  %v442_v11 = vpop.f32.mrb[41].mxu0 }
 0x17f   :  { %v443_v12 = vadd.f32 %v442_v11, %v1605_v56  ;;  %v444_v13 = vpop.f32.mrb[42].mxu0  ;;  %834 = vmatprep.mubr.bf16.mxu1 %v582_v8 }
 0x180   :  { %v445_v14 = vadd.f32 %v444_v13, %v1603_v55  ;;  %v446_v15 = vpop.f32.mrb[43].mxu0  ;;  %835 = vmatmul.mubr.bf16.gmra.mrb[36].mxu1 %v581_v7  ;;  %v539_v17 = vmax.f32 %v441_v10, 0.0 }
 0x181   :  { %v447_v16 = vadd.f32 %v446_v15, %v1605_v56  ;;  %v540_v19 = vmax.f32 %v443_v12, 0.0 }
 0x182   :  { %v541_v18 = vmax.f32 %v445_v14, 0.0 }
 0x183   :  { %v542_v20 = vmax.f32 %v447_v16, 0.0 }
 0x184   :  { %v583_v21 = vpack.c.bf16 %v541_v18, %v539_v17 }
 0x185   :  { %v584_v22 = vpack.c.bf16 %v542_v20, %v540_v19  ;;  %v450_v23 = vpop.f32.mrb[44].mxu0 }
 0x186   :  { %v451_v24 = vadd.f32 %v450_v23, %v1603_v55  ;;  %v452_v25 = vpop.f32.mrb[45].mxu0 }
 0x187   :  { %v453_v26 = vadd.f32 %v452_v25, %v1605_v56  ;;  %v454_v27 = vpop.f32.mrb[46].mxu0  ;;  %842 = vmatprep.mubr.bf16.mxu1 %v584_v22 }
 0x188   :  { %v455_v28 = vadd.f32 %v454_v27, %v1603_v55  ;;  %v456_v29 = vpop.f32.mrb[47].mxu0  ;;  %843 = vmatmul.mubr.bf16.gmra.mrb[40].mxu1 %v583_v21  ;;  %v543_v31 = vmax.f32 %v451_v24, 0.0 }
 0x189   :  { %v457_v30 = vadd.f32 %v456_v29, %v1605_v56  ;;  %v544_v33 = vmax.f32 %v453_v26, 0.0 }
 0x18a   :  { %v545_v32 = vmax.f32 %v455_v28, 0.0 }
 0x18b   :  { %v546_v34 = vmax.f32 %v457_v30, 0.0 }
 0x18c   :  { %v585_v35 = vpack.c.bf16 %v545_v32, %v543_v31 }
 0x18d   :  { %v586_v36 = vpack.c.bf16 %v546_v34, %v544_v33  ;;  %v460_v37 = vpop.f32.mrb[48].mxu0  ;;  %v1674_v33 = vld [vmem:[%s1911_s4] ss:$0 sm:$0xff] }
 0x18e   :  { %v461_v38 = vadd.f32 %v460_v37, %v1603_v55  ;;  %v462_v39 = vpop.f32.mrb[49].mxu0  ;;  %v1680_v37 = vld [vmem:[%s1912_s5] ss:$0 sm:$0xff] }
 0x18f   :  { %v463_v40 = vadd.f32 %v462_v39, %v1605_v56  ;;  %v464_v41 = vpop.f32.mrb[50].mxu0  ;;  %850 = vmatprep.mubr.bf16.mxu1 %v586_v36 }
 0x190   :  { %v465_v42 = vadd.f32 %v464_v41, %v1603_v55  ;;  %v466_v43 = vpop.f32.mrb[51].mxu0  ;;  %851 = vmatmul.mubr.bf16.gmra.mrb[44].mxu1 %v585_v35  ;;  %v547_v45 = vmax.f32 %v461_v38, 0.0 }
 0x191   :  { %v467_v44 = vadd.f32 %v466_v43, %v1605_v56  ;;  %v548_v47 = vmax.f32 %v463_v40, 0.0 }
 0x192   :  { %v549_v46 = vmax.f32 %v465_v42, 0.0 }
 0x193   :  { %v550_v48 = vmax.f32 %v467_v44, 0.0 }
 0x194   :  { %v587_v49 = vpack.c.bf16 %v549_v46, %v547_v45 }
 0x195   :  { %v588_v50 = vpack.c.bf16 %v550_v48, %v548_v47  ;;  %v470_v51 = vpop.f32.mrb[52].mxu0 }
 0x196   :  { %v471_v52 = vadd.f32 %v470_v51, %v1603_v55  ;;  %v472_v53 = vpop.f32.mrb[53].mxu0 }
 0x197   :  { %v473_v54 = vadd.f32 %v472_v53, %v1605_v56  ;;  %v474_v57 = vpop.f32.mrb[54].mxu0  ;;  %858 = vmatprep.mubr.bf16.mxu1 %v588_v50 }
 0x198   :  { %v475_v58 = vadd.f32 %v474_v57, %v1603_v55  ;;  %v476_v59 = vpop.f32.mrb[55].mxu0  ;;  %859 = vmatmul.mubr.bf16.gmra.mrb[48].mxu1 %v587_v49  ;;  %v551_v61 = vmax.f32 %v471_v52, 0.0 }
 0x199   :  { %v477_v60 = vadd.f32 %v476_v59, %v1605_v56  ;;  %v552_v63 = vmax.f32 %v473_v54, 0.0 }
 0x19a   :  { %v553_v62 = vmax.f32 %v475_v58, 0.0 }
 0x19b   :  { %v554_v0 = vmax.f32 %v477_v60, 0.0 }
 0x19c   :  { %v589_v1 = vpack.c.bf16 %v553_v62, %v551_v61 }
 0x19d   :  { %v590_v2 = vpack.c.bf16 %v554_v0, %v552_v63  ;;  %v480_v3 = vpop.f32.mrb[56].mxu0 }
 0x19e   :  { %v481_v4 = vadd.f32 %v480_v3, %v1603_v55  ;;  %v482_v5 = vpop.f32.mrb[57].mxu0 }
 0x19f   :  { %v483_v6 = vadd.f32 %v482_v5, %v1605_v56  ;;  %v484_v7 = vpop.f32.mrb[58].mxu0  ;;  %866 = vmatprep.mubr.bf16.mxu1 %v590_v2 }
 0x1a0   :  { %v485_v8 = vadd.f32 %v484_v7, %v1603_v55  ;;  %v486_v9 = vpop.f32.mrb[59].mxu0  ;;  %867 = vmatmul.mubr.bf16.gmra.mrb[52].mxu1 %v589_v1  ;;  %v555_v11 = vmax.f32 %v481_v4, 0.0 }
 0x1a1   :  { %v487_v10 = vadd.f32 %v486_v9, %v1605_v56  ;;  %v556_v13 = vmax.f32 %v483_v6, 0.0 }
 0x1a2   :  { %v557_v12 = vmax.f32 %v485_v8, 0.0 }
 0x1a3   :  { %v558_v14 = vmax.f32 %v487_v10, 0.0 }
 0x1a4   :  { %v591_v15 = vpack.c.bf16 %v557_v12, %v555_v11 }
 0x1a5   :  { %v592_v16 = vpack.c.bf16 %v558_v14, %v556_v13  ;;  %v490_v17 = vpop.f32.mrb[60].mxu0 }
 0x1a6   :  { %v491_v18 = vadd.f32 %v490_v17, %v1603_v55  ;;  %v492_v19 = vpop.f32.mrb[61].mxu0 }
 0x1a7   :  { %v493_v20 = vadd.f32 %v492_v19, %v1605_v56  ;;  %v494_v21 = vpop.f32.mrb[62].mxu0  ;;  %874 = vmatprep.mubr.bf16.mxu1 %v592_v16 }
 0x1a8   :  { %v495_v22 = vadd.f32 %v494_v21, %v1603_v55  ;;  %v496_v23 = vpop.f32.mrb[63].mxu0  ;;  %875 = vmatmul.mubr.bf16.gmra.mrb[56].mxu1 %v591_v15  ;;  %v559_v25 = vmax.f32 %v491_v18, 0.0 }
 0x1a9   :  { %v497_v24 = vadd.f32 %v496_v23, %v1605_v56  ;;  %v560_v27 = vmax.f32 %v493_v20, 0.0 }
 0x1aa   :  { %v561_v26 = vmax.f32 %v495_v22, 0.0 }
 0x1ab   :  { %v562_v28 = vmax.f32 %v497_v24, 0.0 }
 0x1ac   :  { %v593_v29 = vpack.c.bf16 %v561_v26, %v559_v25 }
 0x1ad   :  { %v594_v30 = vpack.c.bf16 %v562_v28, %v560_v27 }
 0x1af   :  { %882 = vmatprep.mubr.bf16.mxu1 %v594_v30 }
 0x1b0   :  { %883 = vmatmul.mubr.bf16.gmra.mrb[60].mxu1 %v593_v29 }
 0x20b   :  { %v1203_v31 = vpop.f32.mrb[0].mxu1 }
 0x20c   :  { %v1204_v32 = vpop.f32.mrb[1].mxu1 }
 0x20d   :  { %v1205_v55 = vadd.f32 %v1204_v32, %v1203_v31  ;;  %v1206_v34 = vpop.f32.mrb[2].mxu1 }
 0x20e   :  { %v1207_v35 = vpop.f32.mrb[3].mxu1 }
 0x20f   :  { %v1208_v36 = vadd.f32 %v1207_v35, %v1206_v34  ;;  %v765_v56 = vadd.f32 %v1205_v55, %v1674_v33 }
 0x211   :  { %v768_v38 = vadd.f32 %v1208_v36, %v1674_v33  ;;  %v891_v39 = vmax.f32 %v765_v56, 0.0 }
 0x213   :  { %v892_v40 = vmax.f32 %v768_v38, 0.0  ;;  %v1209_v41 = vpop.f32.mrb[4].mxu1  ;;  %v930_v42 = vmul.f32 %v1680_v37, %v891_v39 }
 0x214   :  { %v1210_v43 = vpop.f32.mrb[5].mxu1 }
 0x215   :  { %v1211_v44 = vadd.f32 %v1210_v43, %v1209_v41  ;;  %v1212_v45 = vpop.f32.mrb[6].mxu1  ;;  %962 = vadd.xlane.f32.xlu0 %v930_v42  ;;  %v931_v48 = vmul.f32 %v1680_v37, %v892_v40 }
 0x216   :  { %v1213_v46 = vpop.f32.mrb[7].mxu1 }
 0x217   :  { %v1214_v47 = vadd.f32 %v1213_v46, %v1212_v45  ;;  %v773_v49 = vadd.f32 %v1211_v44, %v1674_v33 }
 0x219   :  { %v776_v50 = vadd.f32 %v1214_v47, %v1674_v33  ;;  %964 = vadd.xlane.f32.xlu0 %v931_v48  ;;  %v893_v51 = vmax.f32 %v773_v49, 0.0 }
 0x21b   :  { %v894_v52 = vmax.f32 %v776_v50, 0.0  ;;  %v1215_v53 = vpop.f32.mrb[8].mxu1  ;;  %v932_v54 = vmul.f32 %v1680_v37, %v893_v51 }
 0x21c   :  { %v1216_v57 = vpop.f32.mrb[9].mxu1 }
 0x21d   :  { %v1217_v58 = vadd.f32 %v1216_v57, %v1215_v53  ;;  %v1218_v59 = vpop.f32.mrb[10].mxu1  ;;  %966 = vadd.xlane.f32.xlu1 %v932_v54  ;;  %v933_v63 = vmul.f32 %v1680_v37, %v894_v52 }
 0x21e   :  { %v1219_v60 = vpop.f32.mrb[11].mxu1 }
 0x21f   :  { %v781_v61 = vadd.f32 %v1217_v58, %v1674_v33  ;;  %v1220_v62 = vadd.f32 %v1219_v60, %v1218_v59 }
 0x221   :  { %v895_v0 = vmax.f32 %v781_v61, 0.0  ;;  %v784_v1 = vadd.f32 %v1220_v62, %v1674_v33  ;;  %968 = vadd.xlane.f32.xlu1 %v933_v63 }
 0x223   :  { %v896_v2 = vmax.f32 %v784_v1, 0.0  ;;  %v1221_v3 = vpop.f32.mrb[12].mxu1  ;;  %v934_v4 = vmul.f32 %v1680_v37, %v895_v0 }
 0x224   :  { %v1222_v5 = vpop.f32.mrb[13].mxu1 }
 0x225   :  { %v1223_v6 = vadd.f32 %v1222_v5, %v1221_v3  ;;  %v1224_v7 = vpop.f32.mrb[14].mxu1  ;;  %970 = vadd.xlane.f32.xlu0 %v934_v4  ;;  %v935_v8 = vmul.f32 %v1680_v37, %v896_v2 }
 0x226   :  { %v1225_v9 = vpop.f32.mrb[15].mxu1 }
 0x227   :  { %v789_v10 = vadd.f32 %v1223_v6, %v1674_v33  ;;  %v1226_v11 = vadd.f32 %v1225_v9, %v1224_v7  ;;  %972 = vadd.xlane.f32.xlu1 %v935_v8 }
 0x229   :  { %v897_v12 = vmax.f32 %v789_v10, 0.0  ;;  %v792_v13 = vadd.f32 %v1226_v11, %v1674_v33 }
 0x22b   :  { %v898_v14 = vmax.f32 %v792_v13, 0.0  ;;  %v1227_v15 = vpop.f32.mrb[16].mxu1  ;;  %v936_v16 = vmul.f32 %v1680_v37, %v897_v12 }
 0x22c   :  { %v1228_v17 = vpop.f32.mrb[17].mxu1 }
 0x22d   :  { %v1229_v18 = vadd.f32 %v1228_v17, %v1227_v15  ;;  %v1230_v19 = vpop.f32.mrb[18].mxu1  ;;  %974 = vadd.xlane.f32.xlu0 %v936_v16  ;;  %v937_v20 = vmul.f32 %v1680_v37, %v898_v14 }
 0x22e   :  { %v1231_v21 = vpop.f32.mrb[19].mxu1 }
 0x22f   :  { %v797_v22 = vadd.f32 %v1229_v18, %v1674_v33  ;;  %v1232_v23 = vadd.f32 %v1231_v21, %v1230_v19  ;;  %976 = vadd.xlane.f32.xlu1 %v937_v20 }
 0x231   :  { %v899_v24 = vmax.f32 %v797_v22, 0.0  ;;  %v800_v25 = vadd.f32 %v1232_v23, %v1674_v33 }
 0x233   :  { %v900_v26 = vmax.f32 %v800_v25, 0.0  ;;  %v1233_v27 = vpop.f32.mrb[20].mxu1  ;;  %v938_v28 = vmul.f32 %v1680_v37, %v899_v24 }
 0x234   :  { %v1234_v29 = vpop.f32.mrb[21].mxu1 }
 0x235   :  { %v1235_v30 = vadd.f32 %v1234_v29, %v1233_v27  ;;  %v1236_v31 = vpop.f32.mrb[22].mxu1  ;;  %978 = vadd.xlane.f32.xlu0 %v938_v28  ;;  %v939_v32 = vmul.f32 %v1680_v37, %v900_v26 }
 0x236   :  { %v1237_v55 = vpop.f32.mrb[23].mxu1 }
 0x237   :  { %v805_v34 = vadd.f32 %v1235_v30, %v1674_v33  ;;  %v1238_v35 = vadd.f32 %v1237_v55, %v1236_v31  ;;  %980 = vadd.xlane.f32.xlu1 %v939_v32 }
 0x239   :  { %v901_v36 = vmax.f32 %v805_v34, 0.0  ;;  %v808_v56 = vadd.f32 %v1238_v35, %v1674_v33 }
 0x23b   :  { %v902_v38 = vmax.f32 %v808_v56, 0.0  ;;  %v1239_v39 = vpop.f32.mrb[24].mxu1  ;;  %v940_v40 = vmul.f32 %v1680_v37, %v901_v36 }
 0x23c   :  { %v1240_v41 = vpop.f32.mrb[25].mxu1 }
 0x23d   :  { %v1241_v42 = vadd.f32 %v1240_v41, %v1239_v39  ;;  %v1242_v43 = vpop.f32.mrb[26].mxu1  ;;  %982 = vadd.xlane.f32.xlu0 %v940_v40  ;;  %v941_v44 = vmul.f32 %v1680_v37, %v902_v38 }
 0x23e   :  { %v1243_v45 = vpop.f32.mrb[27].mxu1 }
 0x23f   :  { %v813_v46 = vadd.f32 %v1241_v42, %v1674_v33  ;;  %v1244_v47 = vadd.f32 %v1243_v45, %v1242_v43  ;;  %984 = vadd.xlane.f32.xlu1 %v941_v44 }
 0x241   :  { %v903_v48 = vmax.f32 %v813_v46, 0.0  ;;  %v816_v49 = vadd.f32 %v1244_v47, %v1674_v33 }
 0x243   :  { %v904_v50 = vmax.f32 %v816_v49, 0.0  ;;  %v1245_v51 = vpop.f32.mrb[28].mxu1  ;;  %v942_v52 = vmul.f32 %v1680_v37, %v903_v48 }
 0x244   :  { %v1246_v53 = vpop.f32.mrb[29].mxu1 }
 0x245   :  { %v1247_v54 = vadd.f32 %v1246_v53, %v1245_v51  ;;  %v1248_v57 = vpop.f32.mrb[30].mxu1  ;;  %986 = vadd.xlane.f32.xlu0 %v942_v52  ;;  %v943_v58 = vmul.f32 %v1680_v37, %v904_v50 }
 0x246   :  { %v1249_v59 = vpop.f32.mrb[31].mxu1 }
 0x247   :  { %v821_v60 = vadd.f32 %v1247_v54, %v1674_v33  ;;  %v1250_v61 = vadd.f32 %v1249_v59, %v1248_v57  ;;  %988 = vadd.xlane.f32.xlu1 %v943_v58 }
 0x249   :  { %v905_v62 = vmax.f32 %v821_v60, 0.0  ;;  %v824_v63 = vadd.f32 %v1250_v61, %v1674_v33 }
 0x24b   :  { %v906_v0 = vmax.f32 %v824_v63, 0.0  ;;  %v1251_v1 = vpop.f32.mrb[32].mxu1  ;;  %v944_v2 = vmul.f32 %v1680_v37, %v905_v62 }
 0x24c   :  { %v1252_v3 = vpop.f32.mrb[33].mxu1 }
 0x24d   :  { %v1253_v4 = vadd.f32 %v1252_v3, %v1251_v1  ;;  %v1254_v5 = vpop.f32.mrb[34].mxu1  ;;  %990 = vadd.xlane.f32.xlu0 %v944_v2  ;;  %v945_v6 = vmul.f32 %v1680_v37, %v906_v0 }
 0x24e   :  { %v1255_v7 = vpop.f32.mrb[35].mxu1 }
 0x24f   :  { %v829_v8 = vadd.f32 %v1253_v4, %v1674_v33  ;;  %v1256_v9 = vadd.f32 %v1255_v7, %v1254_v5  ;;  %992 = vadd.xlane.f32.xlu1 %v945_v6 }
 0x251   :  { %v907_v10 = vmax.f32 %v829_v8, 0.0  ;;  %v832_v11 = vadd.f32 %v1256_v9, %v1674_v33 }
 0x253   :  { %v908_v12 = vmax.f32 %v832_v11, 0.0  ;;  %v1257_v13 = vpop.f32.mrb[36].mxu1  ;;  %v946_v14 = vmul.f32 %v1680_v37, %v907_v10 }
 0x254   :  { %v1258_v15 = vpop.f32.mrb[37].mxu1 }
 0x255   :  { %v1259_v16 = vadd.f32 %v1258_v15, %v1257_v13  ;;  %v1260_v17 = vpop.f32.mrb[38].mxu1  ;;  %994 = vadd.xlane.f32.xlu0 %v946_v14  ;;  %v947_v18 = vmul.f32 %v1680_v37, %v908_v12 }
 0x256   :  { %v1261_v19 = vpop.f32.mrb[39].mxu1 }
 0x257   :  { %v837_v20 = vadd.f32 %v1259_v16, %v1674_v33  ;;  %v1262_v21 = vadd.f32 %v1261_v19, %v1260_v17  ;;  %996 = vadd.xlane.f32.xlu1 %v947_v18 }
 0x259   :  { %v909_v22 = vmax.f32 %v837_v20, 0.0  ;;  %v840_v23 = vadd.f32 %v1262_v21, %v1674_v33 }
 0x25b   :  { %v910_v24 = vmax.f32 %v840_v23, 0.0  ;;  %v1263_v25 = vpop.f32.mrb[40].mxu1  ;;  %v948_v26 = vmul.f32 %v1680_v37, %v909_v22 }
 0x25c   :  { %v1264_v27 = vpop.f32.mrb[41].mxu1 }
 0x25d   :  { %v1265_v28 = vadd.f32 %v1264_v27, %v1263_v25  ;;  %v1266_v29 = vpop.f32.mrb[42].mxu1  ;;  %998 = vadd.xlane.f32.xlu0 %v948_v26  ;;  %v949_v30 = vmul.f32 %v1680_v37, %v910_v24 }
 0x25e   :  { %v1267_v31 = vpop.f32.mrb[43].mxu1 }
 0x25f   :  { %v845_v32 = vadd.f32 %v1265_v28, %v1674_v33  ;;  %v1268_v55 = vadd.f32 %v1267_v31, %v1266_v29  ;;  %1000 = vadd.xlane.f32.xlu1 %v949_v30 }
 0x261   :  { %v911_v34 = vmax.f32 %v845_v32, 0.0  ;;  %v848_v35 = vadd.f32 %v1268_v55, %v1674_v33 }
 0x263   :  { %v912_v36 = vmax.f32 %v848_v35, 0.0  ;;  %v1269_v56 = vpop.f32.mrb[44].mxu1  ;;  %v950_v38 = vmul.f32 %v1680_v37, %v911_v34 }
 0x264   :  { %v1270_v39 = vpop.f32.mrb[45].mxu1 }
 0x265   :  { %v1271_v40 = vadd.f32 %v1270_v39, %v1269_v56  ;;  %v1272_v41 = vpop.f32.mrb[46].mxu1  ;;  %1002 = vadd.xlane.f32.xlu0 %v950_v38  ;;  %v951_v42 = vmul.f32 %v1680_v37, %v912_v36  ;;  %v1745_v56 = vld [vmem:[#allocation2] ss:$0 sm:$0xff] }
 0x266   :  { %v1273_v43 = vpop.f32.mrb[47].mxu1 }
 0x267   :  { %v853_v44 = vadd.f32 %v1271_v40, %v1674_v33  ;;  %v1274_v45 = vadd.f32 %v1273_v43, %v1272_v41  ;;  %1004 = vadd.xlane.f32.xlu1 %v951_v42 }
 0x269   :  { %v913_v46 = vmax.f32 %v853_v44, 0.0  ;;  %v856_v47 = vadd.f32 %v1274_v45, %v1674_v33 }
 0x26b   :  { %v914_v48 = vmax.f32 %v856_v47, 0.0  ;;  %v1275_v49 = vpop.f32.mrb[48].mxu1  ;;  %v952_v50 = vmul.f32 %v1680_v37, %v913_v46 }
 0x26c   :  { %v1276_v51 = vpop.f32.mrb[49].mxu1 }
 0x26d   :  { %v1277_v52 = vadd.f32 %v1276_v51, %v1275_v49  ;;  %v1278_v53 = vpop.f32.mrb[50].mxu1  ;;  %1006 = vadd.xlane.f32.xlu0 %v952_v50  ;;  %v953_v54 = vmul.f32 %v1680_v37, %v914_v48 }
 0x26e   :  { %v1279_v57 = vpop.f32.mrb[51].mxu1 }
 0x26f   :  { %v861_v58 = vadd.f32 %v1277_v52, %v1674_v33  ;;  %v1280_v59 = vadd.f32 %v1279_v57, %v1278_v53  ;;  %1008 = vadd.xlane.f32.xlu1 %v953_v54 }
 0x271   :  { %v915_v60 = vmax.f32 %v861_v58, 0.0  ;;  %v864_v61 = vadd.f32 %v1280_v59, %v1674_v33 }
 0x273   :  { %v916_v62 = vmax.f32 %v864_v61, 0.0  ;;  %v1281_v63 = vpop.f32.mrb[52].mxu1  ;;  %v954_v0 = vmul.f32 %v1680_v37, %v915_v60 }
 0x274   :  { %v1282_v1 = vpop.f32.mrb[53].mxu1 }
 0x275   :  { %v1283_v2 = vadd.f32 %v1282_v1, %v1281_v63  ;;  %v1284_v3 = vpop.f32.mrb[54].mxu1  ;;  %1010 = vadd.xlane.f32.xlu0 %v954_v0  ;;  %v955_v4 = vmul.f32 %v1680_v37, %v916_v62 }
 0x276   :  { %v1285_v5 = vpop.f32.mrb[55].mxu1 }
 0x277   :  { %v869_v6 = vadd.f32 %v1283_v2, %v1674_v33  ;;  %v1286_v7 = vadd.f32 %v1285_v5, %v1284_v3  ;;  %1012 = vadd.xlane.f32.xlu1 %v955_v4 }
 0x279   :  { %v917_v8 = vmax.f32 %v869_v6, 0.0  ;;  %v872_v9 = vadd.f32 %v1286_v7, %v1674_v33 }
 0x27b   :  { %v918_v10 = vmax.f32 %v872_v9, 0.0  ;;  %v1287_v11 = vpop.f32.mrb[56].mxu1  ;;  %v956_v12 = vmul.f32 %v1680_v37, %v917_v8 }
 0x27c   :  { %v1288_v13 = vpop.f32.mrb[57].mxu1 }
 0x27d   :  { %v1289_v14 = vadd.f32 %v1288_v13, %v1287_v11  ;;  %v1290_v15 = vpop.f32.mrb[58].mxu1  ;;  %1014 = vadd.xlane.f32.xlu0 %v956_v12  ;;  %v957_v16 = vmul.f32 %v1680_v37, %v918_v10 }
 0x27e   :  { %v1291_v17 = vpop.f32.mrb[59].mxu1 }
 0x27f   :  { %v877_v18 = vadd.f32 %v1289_v14, %v1674_v33  ;;  %v1292_v19 = vadd.f32 %v1291_v17, %v1290_v15  ;;  %1016 = vadd.xlane.f32.xlu1 %v957_v16 }
 0x281   :  { %v919_v20 = vmax.f32 %v877_v18, 0.0  ;;  %v880_v21 = vadd.f32 %v1292_v19, %v1674_v33 }
 0x283   :  { %v920_v22 = vmax.f32 %v880_v21, 0.0  ;;  %v1293_v23 = vpop.f32.mrb[60].mxu1  ;;  %v958_v24 = vmul.f32 %v1680_v37, %v919_v20 }
 0x284   :  { %v1294_v25 = vpop.f32.mrb[61].mxu1 }
 0x285   :  { %v1295_v26 = vadd.f32 %v1294_v25, %v1293_v23  ;;  %v1296_v27 = vpop.f32.mrb[62].mxu1  ;;  %1018 = vadd.xlane.f32.xlu0 %v958_v24  ;;  %v959_v28 = vmul.f32 %v1680_v37, %v920_v22 }
 0x286   :  { %v1297_v29 = vpop.f32.mrb[63].mxu1 }
 0x287   :  { %v885_v30 = vadd.f32 %v1295_v26, %v1674_v33  ;;  %v1298_v31 = vadd.f32 %v1297_v29, %v1296_v27  ;;  %1020 = vadd.xlane.f32.xlu1 %v959_v28 }
 0x289   :  { %v921_v32 = vmax.f32 %v885_v30, 0.0  ;;  %v888_v55 = vadd.f32 %v1298_v31, %v1674_v33 }
 0x28b   :  { %v922_v34 = vmax.f32 %v888_v55, 0.0  ;;  %v960_v35 = vmul.f32 %v1680_v37, %v921_v32 }
 0x28d   :  { %1022 = vadd.xlane.f32.xlu0 %v960_v35  ;;  %v961_v36 = vmul.f32 %v1680_v37, %v922_v34 }
 0x28f   :  { %1024 = vadd.xlane.f32.xlu1 %v961_v36 }
 0x2a2   :  { %v963_v38 = vpop.xlane.xlu0 %962 }
 0x2a3   :  { %v1033_v39 = vadd.f32 %v1745_v56, %v963_v38 }
 0x2a5   :  { %1363 = vtanh.f32 %v1033_v39 }
 0x2a6   :  { %v965_v40 = vpop.xlane.xlu0 %964 }
 0x2a7   :  { %v1034_v41 = vadd.f32 %v1745_v56, %v965_v40 }
 0x2a9   :  { %1365 = vtanh.f32 %v1034_v41 }
 0x2aa   :  { %v967_v42 = vpop.xlane.xlu1 %966 }
 0x2ab   :  { %v1035_v33 = vadd.f32 %v1745_v56, %v967_v42 }
 0x2ad   :  { %1367 = vtanh.f32 %v1035_v33 }
 0x2ae   :  { %v969_v43 = vpop.xlane.xlu1 %968 }
 0x2af   :  { %v1364_v44 = vpop.eup %1363  ;;  %v1036_v37 = vadd.f32 %v1745_v56, %v969_v43 }
 0x2b0   :  { %1098 = vst.msk [vmem:[%s1914_s7] sm:$0xff] %vm1097_vm0, %v1364_v44 }
 0x2b1   :  { %1369 = vtanh.f32 %v1036_v37 }
 0x2b2   :  { %v971_v45 = vpop.xlane.xlu0 %970 }
 0x2b3   :  { %v1366_v46 = vpop.eup %1365  ;;  %v1037_v47 = vadd.f32 %v1745_v56, %v971_v45 }
 0x2b4   :  { %1099 = vst.msk [vmem:[%s1914_s7 + $0x8] sm:$0xff] %vm1097_vm0, %v1366_v46  ;;  %v973_v48 = vpop.xlane.xlu1 %972 }
 0x2b5   :  { %1371 = vtanh.f32 %v1037_v47  ;;  %v1038_v49 = vadd.f32 %v1745_v56, %v973_v48 }
 0x2b7   :  { %v1368_v50 = vpop.eup %1367  ;;  %1373 = vtanh.f32 %v1038_v49 }
 0x2b8   :  { %1100 = vst.msk [vmem:[%s1914_s7 + $0x10] sm:$0xff] %vm1097_vm0, %v1368_v50 }
 0x2ba   :  { %v975_v51 = vpop.xlane.xlu0 %974 }
 0x2bb   :  { %v1370_v52 = vpop.eup %1369  ;;  %v1039_v53 = vadd.f32 %v1745_v56, %v975_v51 }
 0x2bc   :  { %1101 = vst.msk [vmem:[%s1914_s7 + $0x18] sm:$0xff] %vm1097_vm0, %v1370_v52  ;;  %v977_v54 = vpop.xlane.xlu1 %976 }
 0x2bd   :  { %1375 = vtanh.f32 %v1039_v53  ;;  %v1040_v57 = vadd.f32 %v1745_v56, %v977_v54 }
 0x2bf   :  { %v1372_v58 = vpop.eup %1371  ;;  %1377 = vtanh.f32 %v1040_v57 }
 0x2c0   :  { %1102 = vst.msk [vmem:[%s1914_s7 + $0x20] sm:$0xff] %vm1097_vm0, %v1372_v58 }
 0x2c1   :  { %v1374_v59 = vpop.eup %1373 }
 0x2c2   :  { %1103 = vst.msk [vmem:[%s1914_s7 + $0x28] sm:$0xff] %vm1097_vm0, %v1374_v59  ;;  %v979_v60 = vpop.xlane.xlu0 %978 }
 0x2c3   :  { %v1041_v61 = vadd.f32 %v1745_v56, %v979_v60 }
 0x2c4   :  { %v981_v62 = vpop.xlane.xlu1 %980 }
 0x2c5   :  { %1379 = vtanh.f32 %v1041_v61  ;;  %v1042_v63 = vadd.f32 %v1745_v56, %v981_v62 }
 0x2c7   :  { %v1376_v0 = vpop.eup %1375  ;;  %1381 = vtanh.f32 %v1042_v63 }
 0x2c8   :  { %1104 = vst.msk [vmem:[%s1914_s7 + $0x30] sm:$0xff] %vm1097_vm0, %v1376_v0 }
 0x2c9   :  { %v1378_v1 = vpop.eup %1377 }
 0x2ca   :  { %1105 = vst.msk [vmem:[%s1914_s7 + $0x38] sm:$0xff] %vm1097_vm0, %v1378_v1  ;;  %v983_v2 = vpop.xlane.xlu0 %982 }
 0x2cb   :  { %v1043_v3 = vadd.f32 %v1745_v56, %v983_v2 }
 0x2cc   :  { %v985_v4 = vpop.xlane.xlu1 %984 }
 0x2cd   :  { %1383 = vtanh.f32 %v1043_v3  ;;  %v1044_v5 = vadd.f32 %v1745_v56, %v985_v4 }
 0x2cf   :  { %v1380_v6 = vpop.eup %1379  ;;  %1385 = vtanh.f32 %v1044_v5 }
 0x2d0   :  { %1106 = vst.msk [vmem:[%s1914_s7 + $0x40] sm:$0xff] %vm1097_vm0, %v1380_v6 }
 0x2d1   :  { %v1382_v7 = vpop.eup %1381 }
 0x2d2   :  { %1107 = vst.msk [vmem:[%s1914_s7 + $0x48] sm:$0xff] %vm1097_vm0, %v1382_v7  ;;  %v987_v8 = vpop.xlane.xlu0 %986 }
 0x2d3   :  { %v1045_v9 = vadd.f32 %v1745_v56, %v987_v8 }
 0x2d4   :  { %v989_v10 = vpop.xlane.xlu1 %988 }
 0x2d5   :  { %1387 = vtanh.f32 %v1045_v9  ;;  %v1046_v11 = vadd.f32 %v1745_v56, %v989_v10 }
 0x2d7   :  { %v1384_v12 = vpop.eup %1383  ;;  %1389 = vtanh.f32 %v1046_v11 }
 0x2d8   :  { %1108 = vst.msk [vmem:[%s1914_s7 + $0x50] sm:$0xff] %vm1097_vm0, %v1384_v12 }
 0x2d9   :  { %v1386_v13 = vpop.eup %1385 }
 0x2da   :  { %1109 = vst.msk [vmem:[%s1914_s7 + $0x58] sm:$0xff] %vm1097_vm0, %v1386_v13  ;;  %v991_v14 = vpop.xlane.xlu0 %990 }
 0x2db   :  { %v1047_v15 = vadd.f32 %v1745_v56, %v991_v14 }
 0x2dc   :  { %v993_v16 = vpop.xlane.xlu1 %992 }
 0x2dd   :  { %1391 = vtanh.f32 %v1047_v15  ;;  %v1048_v17 = vadd.f32 %v1745_v56, %v993_v16 }
 0x2df   :  { %v1388_v18 = vpop.eup %1387  ;;  %1393 = vtanh.f32 %v1048_v17 }
 0x2e0   :  { %1110 = vst.msk [vmem:[%s1914_s7 + $0x60] sm:$0xff] %vm1097_vm0, %v1388_v18 }
 0x2e1   :  { %v1390_v19 = vpop.eup %1389 }
 0x2e2   :  { %1111 = vst.msk [vmem:[%s1914_s7 + $0x68] sm:$0xff] %vm1097_vm0, %v1390_v19  ;;  %v995_v20 = vpop.xlane.xlu0 %994 }
 0x2e3   :  { %v1049_v21 = vadd.f32 %v1745_v56, %v995_v20 }
 0x2e4   :  { %v997_v22 = vpop.xlane.xlu1 %996 }
 0x2e5   :  { %1395 = vtanh.f32 %v1049_v21  ;;  %v1050_v23 = vadd.f32 %v1745_v56, %v997_v22 }
 0x2e7   :  { %v1392_v24 = vpop.eup %1391  ;;  %1397 = vtanh.f32 %v1050_v23 }
 0x2e8   :  { %1112 = vst.msk [vmem:[%s1914_s7 + $0x70] sm:$0xff] %vm1097_vm0, %v1392_v24 }
 0x2e9   :  { %v1394_v25 = vpop.eup %1393 }
 0x2ea   :  { %1113 = vst.msk [vmem:[%s1914_s7 + $0x78] sm:$0xff] %vm1097_vm0, %v1394_v25  ;;  %v999_v26 = vpop.xlane.xlu0 %998 }
 0x2eb   :  { %v1051_v27 = vadd.f32 %v1745_v56, %v999_v26 }
 0x2ec   :  { %v1001_v28 = vpop.xlane.xlu1 %1000 }
 0x2ed   :  { %1399 = vtanh.f32 %v1051_v27  ;;  %v1052_v29 = vadd.f32 %v1745_v56, %v1001_v28 }
 0x2ef   :  { %v1396_v30 = vpop.eup %1395  ;;  %1401 = vtanh.f32 %v1052_v29 }
 0x2f0   :  { %1114 = vst.msk [vmem:[%s1914_s7 + $0x80] sm:$0xff] %vm1097_vm0, %v1396_v30 }
 0x2f1   :  { %v1398_v31 = vpop.eup %1397 }
 0x2f2   :  { %1115 = vst.msk [vmem:[%s1914_s7 + $0x88] sm:$0xff] %vm1097_vm0, %v1398_v31  ;;  %v1003_v32 = vpop.xlane.xlu0 %1002 }
 0x2f3   :  { %v1053_v55 = vadd.f32 %v1745_v56, %v1003_v32 }
 0x2f4   :  { %v1005_v34 = vpop.xlane.xlu1 %1004 }
 0x2f5   :  { %1403 = vtanh.f32 %v1053_v55  ;;  %v1054_v35 = vadd.f32 %v1745_v56, %v1005_v34 }
 0x2f7   :  { %v1400_v36 = vpop.eup %1399  ;;  %1405 = vtanh.f32 %v1054_v35 }
 0x2f8   :  { %1116 = vst.msk [vmem:[%s1914_s7 + $0x90] sm:$0xff] %vm1097_vm0, %v1400_v36 }
 0x2f9   :  { %v1402_v38 = vpop.eup %1401 }
 0x2fa   :  { %1117 = vst.msk [vmem:[%s1914_s7 + $0x98] sm:$0xff] %vm1097_vm0, %v1402_v38  ;;  %v1007_v39 = vpop.xlane.xlu0 %1006 }
 0x2fb   :  { %v1055_v40 = vadd.f32 %v1745_v56, %v1007_v39 }
 0x2fc   :  { %v1009_v41 = vpop.xlane.xlu1 %1008 }
 0x2fd   :  { %1407 = vtanh.f32 %v1055_v40  ;;  %v1056_v42 = vadd.f32 %v1745_v56, %v1009_v41 }
 0x2ff   :  { %v1404_v33 = vpop.eup %1403  ;;  %1409 = vtanh.f32 %v1056_v42 }
 0x300   :  { %1118 = vst.msk [vmem:[%s1914_s7 + $0xa0] sm:$0xff] %vm1097_vm0, %v1404_v33 }
 0x301   :  { %v1406_v43 = vpop.eup %1405 }
 0x302   :  { %1119 = vst.msk [vmem:[%s1914_s7 + $0xa8] sm:$0xff] %vm1097_vm0, %v1406_v43  ;;  %v1011_v44 = vpop.xlane.xlu0 %1010 }
 0x303   :  { %v1057_v37 = vadd.f32 %v1745_v56, %v1011_v44 }
 0x304   :  { %v1013_v45 = vpop.xlane.xlu1 %1012 }
 0x305   :  { %1411 = vtanh.f32 %v1057_v37  ;;  %v1058_v46 = vadd.f32 %v1745_v56, %v1013_v45 }
 0x307   :  { %v1408_v47 = vpop.eup %1407  ;;  %1413 = vtanh.f32 %v1058_v46 }
 0x308   :  { %1120 = vst.msk [vmem:[%s1914_s7 + $0xb0] sm:$0xff] %vm1097_vm0, %v1408_v47 }
 0x309   :  { %v1410_v48 = vpop.eup %1409 }
 0x30a   :  { %1121 = vst.msk [vmem:[%s1914_s7 + $0xb8] sm:$0xff] %vm1097_vm0, %v1410_v48  ;;  %v1015_v49 = vpop.xlane.xlu0 %1014 }
 0x30b   :  { %v1059_v50 = vadd.f32 %v1745_v56, %v1015_v49 }
 0x30c   :  { %v1017_v51 = vpop.xlane.xlu1 %1016 }
 0x30d   :  { %1415 = vtanh.f32 %v1059_v50  ;;  %v1060_v52 = vadd.f32 %v1745_v56, %v1017_v51 }
 0x30f   :  { %v1412_v53 = vpop.eup %1411  ;;  %1417 = vtanh.f32 %v1060_v52 }
 0x310   :  { %1122 = vst.msk [vmem:[%s1914_s7 + $0xc0] sm:$0xff] %vm1097_vm0, %v1412_v53 }
 0x311   :  { %v1414_v54 = vpop.eup %1413 }
 0x312   :  { %1123 = vst.msk [vmem:[%s1914_s7 + $0xc8] sm:$0xff] %vm1097_vm0, %v1414_v54  ;;  %v1019_v57 = vpop.xlane.xlu0 %1018 }
 0x313   :  { %v1061_v58 = vadd.f32 %v1745_v56, %v1019_v57 }
 0x314   :  { %v1021_v59 = vpop.xlane.xlu1 %1020 }
 0x315   :  { %1419 = vtanh.f32 %v1061_v58  ;;  %v1062_v60 = vadd.f32 %v1745_v56, %v1021_v59 }
 0x317   :  { %v1416_v61 = vpop.eup %1415  ;;  %1421 = vtanh.f32 %v1062_v60 }
 0x318   :  { %1124 = vst.msk [vmem:[%s1914_s7 + $0xd0] sm:$0xff] %vm1097_vm0, %v1416_v61 }
 0x319   :  { %v1418_v62 = vpop.eup %1417 }
 0x31a   :  { %1125 = vst.msk [vmem:[%s1914_s7 + $0xd8] sm:$0xff] %vm1097_vm0, %v1418_v62  ;;  %v1023_v63 = vpop.xlane.xlu0 %1022 }
 0x31b   :  { %v1063_v0 = vadd.f32 %v1745_v56, %v1023_v63 }
 0x31c   :  { %v1025_v1 = vpop.xlane.xlu1 %1024 }
 0x31d   :  { %1423 = vtanh.f32 %v1063_v0  ;;  %v1064_v2 = vadd.f32 %v1745_v56, %v1025_v1 }
 0x31f   :  { %v1420_v3 = vpop.eup %1419  ;;  %1425 = vtanh.f32 %v1064_v2 }
 0x320   :  { %1126 = vst.msk [vmem:[%s1914_s7 + $0xe0] sm:$0xff] %vm1097_vm0, %v1420_v3 }
 0x321   :  { %v1422_v4 = vpop.eup %1421 }
 0x322   :  { %1127 = vst.msk [vmem:[%s1914_s7 + $0xe8] sm:$0xff] %vm1097_vm0, %v1422_v4 }
 0x327   :  { %v1424_v5 = vpop.eup %1423 }
 0x328   :  { %1128 = vst.msk [vmem:[%s1914_s7 + $0xf0] sm:$0xff] %vm1097_vm0, %v1424_v5 }
 0x329   :  { %v1426_v56 = vpop.eup %1425 }
 0x32a   :  { %1129 = vst.msk [vmem:[%s1914_s7 + $0xf8] sm:$0xff] %vm1097_vm0, %v1426_v56 }
 0x32b   :  { %1134 = vsyncpa [#allocation4], 1 }
 0x32c   :  { %1135 = vsyncpa [#allocation6], 1 }

</bundles_post_ra>
